<compile_context>
chip_gen: v7x
topology: tpu7x:2x2x1
jax: 0.10.0
libtpu: 0.0.40
codegen_flags: <defaults>
</compile_context>

<pallas_src>
import jax
import jax.numpy as jnp
from jax.experimental import pallas as pl
from jax.experimental.pallas import tpu as pltpu

_EPS = 1e-6


def _round_up(x, m):
    return ((x + m - 1) // m) * m


def _residual_conn_kernel(x_ref, a_ref, b_ref, w_ref, bias_ref, o_ref):
    # Single f32 copy of x, reused for both LayerNorm and the residual add.
    x = x_ref[...].astype(jnp.float32)                      # (TM, D)
    d = x.shape[-1]

    # LayerNorm with torch-style unbiased std (ddof = 1).
    mean = jnp.mean(x, axis=-1, keepdims=True)
    centered = x - mean
    var_unbiased = jnp.sum(centered * centered, axis=-1, keepdims=True) / (d - 1)
    std = jnp.sqrt(var_unbiased)
    inv = pl.reciprocal(std + _EPS, approx=True)            # EUP, not VALU
    normed = (centered * inv) * a_ref[...] + b_ref[...]

    # Sublayer: Linear(D, D) on the MXU in bf16, f32 accumulation.
    y = jnp.dot(normed.astype(jnp.bfloat16), w_ref[...],
                preferred_element_type=jnp.float32)
    y = y + bias_ref[...]

    # Dropout (inference mode) is identity; residual add.
    o_ref[...] = (x + y).astype(o_ref.dtype)


def residual_conn(x, a_2, b_2, w, bias, *, tm=256):
    """x: (B, S, D). Returns x + Linear(LayerNorm(x)), same shape/dtype."""
    B, S, D = x.shape
    rows = B * S

    # Row tile: multiple of 8 sublanes; never larger than (padded) row count.
    tm = min(tm, _round_up(rows, 8))
    rows_p = _round_up(rows, tm)

    x2 = x.reshape(rows, D)
    if rows_p != rows:
        # Zero rows are harmless through LN (centered==0) and are sliced off.
        x2 = jnp.pad(x2, ((0, rows_p - rows), (0, 0)))

    a2 = a_2.reshape(1, D).astype(jnp.float32)
    b2 = b_2.reshape(1, D).astype(jnp.float32)
    w_bf16 = w.astype(jnp.bfloat16)                         # resident bf16 weight
    bias2 = bias.reshape(1, D).astype(jnp.float32)

    out = pl.pallas_call(
        _residual_conn_kernel,
        out_shape=jax.ShapeDtypeStruct((rows_p, D), x.dtype),
        grid_spec=pl.GridSpec(
            grid=(rows_p // tm,),
            in_specs=[
                pl.BlockSpec((tm, D), lambda i: (i, 0)),    # x rows (streamed)
                pl.BlockSpec((1, D), lambda i: (0, 0)),     # a_2
                pl.BlockSpec((1, D), lambda i: (0, 0)),     # b_2
                pl.BlockSpec((D, D), lambda i: (0, 0)),     # weight (bf16, resident)
                pl.BlockSpec((1, D), lambda i: (0, 0)),     # bias
            ],
            out_specs=pl.BlockSpec((tm, D), lambda i: (i, 0)),
        ),
        compiler_params=pltpu.CompilerParams(
            dimension_semantics=("parallel",),
            vmem_limit_bytes=48 * 1024 * 1024,
        ),
    )(x2, a2, b2, w_bf16, bias2)

    if rows_p != rows:
        out = out[:rows]
    return out.reshape(B, S, D)


def _reference(x, a_2, b_2, w, bias):
    """Pure-JAX f32 reference matching the PyTorch module semantics."""
    xf = x.astype(jnp.float32)
    d = xf.shape[-1]
    mean = jnp.mean(xf, axis=-1, keepdims=True)
    centered = xf - mean
    std = jnp.sqrt(jnp.sum(centered**2, axis=-1, keepdims=True) / (d - 1))
    normed = a_2 * centered / (std + _EPS) + b_2
    y = normed @ w + bias
    return (xf + y).astype(x.dtype)


if __name__ == "__main__":
    # Small but lane-dense shapes: d_model = 128 keeps stores full-width.
    B, S, D = 2, 8, 128
    key = jax.random.PRNGKey(0)
    kx, kw, kb = jax.random.split(key, 3)

    x = jax.random.normal(kx, (B, S, D), dtype=jnp.float32)

    # LayerNorm params: exactly as nn.Parameter(torch.ones/zeros(features)).
    a_2 = jnp.ones((D,), dtype=jnp.float32)
    b_2 = jnp.zeros((D,), dtype=jnp.float32)

    # Sublayer Linear(D, D) params, deterministic from the PRNG key.
    w = jax.random.normal(kw, (D, D), dtype=jnp.float32) * (1.0 / D**0.5)
    bias = jax.random.normal(kb, (D,), dtype=jnp.float32) * 0.01

    out = residual_conn(x, a_2, b_2, w, bias)
    out = jax.block_until_ready(out)

    ref = _reference(x, a_2, b_2, w, bias)
    assert out.shape == (B, S, D)
    # Tolerance reflects the intentional bf16 matmul + approx reciprocal
    # (f32 accumulation keeps the error ~1e-3 for these magnitudes).
    assert jnp.allclose(out, ref, atol=2e-2, rtol=2e-2), "mismatch vs reference"

    print("KERNEL_OK")
</pallas_src>

<mosaic_0001>
module attributes {stable_mosaic.version = 11 : i64} {
  func.func @_residual_conn_kernel(%arg0: i32, %arg1: memref<16x128xf32, #tpu.memory_space<vmem>>, %arg2: memref<1x128xf32, #tpu.memory_space<vmem>>, %arg3: memref<1x128xf32, #tpu.memory_space<vmem>>, %arg4: memref<128x128xbf16, #tpu.memory_space<vmem>>, %arg5: memref<1x128xf32, #tpu.memory_space<vmem>>, %arg6: memref<16x128xf32, #tpu.memory_space<vmem>>) attributes {dimension_semantics = [#tpu.dimension_semantics<parallel>], iteration_bounds = array<i64: 1>, scalar_prefetch = 0 : i64, scratch_operands = 0 : i64, tpu.core_type = #tpu.core_type<tc>, window_params = [{transform_indices = @transform_0, window_bounds = array<i64: 16, 128>}, {pipeline_mode = #tpu.pipeline_mode<synchronous>, transform_indices = @transform_1, window_bounds = array<i64: 1, 128>}, {pipeline_mode = #tpu.pipeline_mode<synchronous>, transform_indices = @transform_2, window_bounds = array<i64: 1, 128>}, {pipeline_mode = #tpu.pipeline_mode<synchronous>, transform_indices = @transform_3, window_bounds = array<i64: 128, 128>}, {pipeline_mode = #tpu.pipeline_mode<synchronous>, transform_indices = @transform_4, window_bounds = array<i64: 1, 128>}, {transform_indices = @transform_5, window_bounds = array<i64: 16, 128>}]} {
    %c0 = arith.constant 0 : index
    %c0_0 = arith.constant 0 : index
    %0 = vector.load %arg1[%c0, %c0_0] : memref<16x128xf32, #tpu.memory_space<vmem>>, vector<16x128xf32>
    %cst = arith.constant dense<0.000000e+00> : vector<16xf32>
    %1 = vector.multi_reduction <add>, %0, %cst [1] : vector<16x128xf32> to vector<16xf32>
    %2 = vector.shape_cast %1 : vector<16xf32> to vector<16x1xf32>
    %cst_1 = arith.constant 1.280000e+02 : f32
    %3 = vector.broadcast %cst_1 : f32 to vector<16x1xf32>
    %4 = arith.divf %2, %3 : vector<16x1xf32>
    %5 = vector.broadcast %4 : vector<16x1xf32> to vector<16x128xf32>
    %6 = arith.subf %0, %5 : vector<16x128xf32>
    %7 = arith.mulf %6, %6 : vector<16x128xf32>
    %cst_2 = arith.constant dense<0.000000e+00> : vector<16xf32>
    %8 = vector.multi_reduction <add>, %7, %cst_2 [1] : vector<16x128xf32> to vector<16xf32>
    %9 = vector.shape_cast %8 : vector<16xf32> to vector<16x1xf32>
    %cst_3 = arith.constant 1.270000e+02 : f32
    %10 = vector.broadcast %cst_3 : f32 to vector<16x1xf32>
    %11 = arith.divf %9, %10 : vector<16x1xf32>
    %12 = math.sqrt %11 : vector<16x1xf32>
    %cst_4 = arith.constant 9.99999997E-7 : f32
    %13 = vector.broadcast %cst_4 : f32 to vector<16x1xf32>
    %14 = arith.addf %12, %13 : vector<16x1xf32>
    %15 = tpu.reciprocal %14 {approx = true} : vector<16x1xf32> -> vector<16x1xf32>
    %16 = vector.broadcast %15 : vector<16x1xf32> to vector<16x128xf32>
    %17 = arith.mulf %6, %16 : vector<16x128xf32>
    %c0_5 = arith.constant 0 : index
    %c0_6 = arith.constant 0 : index
    %18 = vector.load %arg2[%c0_5, %c0_6] : memref<1x128xf32, #tpu.memory_space<vmem>>, vector<1x128xf32>
    %19 = vector.broadcast %18 : vector<1x128xf32> to vector<16x128xf32>
    %20 = arith.mulf %17, %19 : vector<16x128xf32>
    %c0_7 = arith.constant 0 : index
    %c0_8 = arith.constant 0 : index
    %21 = vector.load %arg3[%c0_7, %c0_8] : memref<1x128xf32, #tpu.memory_space<vmem>>, vector<1x128xf32>
    %22 = vector.broadcast %21 : vector<1x128xf32> to vector<16x128xf32>
    %23 = arith.addf %20, %22 : vector<16x128xf32>
    %24 = arith.truncf %23 : vector<16x128xf32> to vector<16x128xbf16>
    %c0_9 = arith.constant 0 : index
    %c0_10 = arith.constant 0 : index
    %25 = vector.load %arg4[%c0_9, %c0_10] : memref<128x128xbf16, #tpu.memory_space<vmem>>, vector<128x128xbf16>
    %cst_11 = arith.constant dense<0.000000e+00> : vector<16x128xf32>
    %26 = tpu.matmul %24, %25, %cst_11 {dimension_numbers = #tpu.dot_dimension_numbers<[1], [0], [0], [1], [0, 0, 1, 1], [], []>} : vector<16x128xbf16>, vector<128x128xbf16>, vector<16x128xf32> -> vector<16x128xf32>
    %c0_12 = arith.constant 0 : index
    %c0_13 = arith.constant 0 : index
    %27 = vector.load %arg5[%c0_12, %c0_13] : memref<1x128xf32, #tpu.memory_space<vmem>>, vector<1x128xf32>
    %28 = vector.broadcast %27 : vector<1x128xf32> to vector<16x128xf32>
    %29 = arith.addf %26, %28 : vector<16x128xf32>
    %30 = arith.addf %0, %29 : vector<16x128xf32>
    %c0_14 = arith.constant 0 : index
    %c0_15 = arith.constant 0 : index
    %31 = vector.load %arg6[%c0_14, %c0_15] : memref<16x128xf32, #tpu.memory_space<vmem>>, vector<16x128xf32>
    tpu.vector_store %arg6[%c0_14, %c0_15], %30 {strides = array<i32>} : memref<16x128xf32, #tpu.memory_space<vmem>>, vector<16x128xf32>,
    return
  }
  func.func @transform_0(%arg0: i32) -> (i32, i32) {
    %c0_i32 = arith.constant 0 : i32
    %c0_i32_0 = arith.constant 0 : i32
    return %arg0, %c0_i32 : i32, i32
  }
  func.func @transform_1(%arg0: i32) -> (i32, i32) {
    %c0_i32 = arith.constant 0 : i32
    %c0_i32_0 = arith.constant 0 : i32
    %c0_i32_1 = arith.constant 0 : i32
    return %c0_i32, %c0_i32_0 : i32, i32
  }
  func.func @transform_2(%arg0: i32) -> (i32, i32) {
    %c0_i32 = arith.constant 0 : i32
    %c0_i32_0 = arith.constant 0 : i32
    %c0_i32_1 = arith.constant 0 : i32
    return %c0_i32, %c0_i32_0 : i32, i32
  }
  func.func @transform_3(%arg0: i32) -> (i32, i32) {
    %c0_i32 = arith.constant 0 : i32
    %c0_i32_0 = arith.constant 0 : i32
    %c0_i32_1 = arith.constant 0 : i32
    return %c0_i32, %c0_i32_0 : i32, i32
  }
  func.func @transform_4(%arg0: i32) -> (i32, i32) {
    %c0_i32 = arith.constant 0 : i32
    %c0_i32_0 = arith.constant 0 : i32
    %c0_i32_1 = arith.constant 0 : i32
    return %c0_i32, %c0_i32_0 : i32, i32
  }
  func.func @transform_5(%arg0: i32) -> (i32, i32) {
    %c0_i32 = arith.constant 0 : i32
    %c0_i32_0 = arith.constant 0 : i32
    return %arg0, %c0_i32 : i32, i32
  }
}

</mosaic_0001>

<bundles_post_ra>
// kernel: tpu_custom_call.1
= control target key start
LH: loop header
LB: loop body
LE: loop exit
PB: predicated region body
PF: predicated region fallthrough
CT: control target
= control target key end

     0   :  { %10 = vsyncpa [#allocation3], 0  ;;  %s480_s0 = inlined_call_operand.hbm [shape: f32[16,128], index: 0, kind: input, shape index: {}]   ;;  %s481_s1 = inlined_call_operand.vmem [shape: f32[1,128], index: 1, kind: input, shape index: {}]   ;;  %s482_s2 = inlined_call_operand.vmem [shape: f32[1,128], index: 2, kind: input, shape index: {}]   ;;  %s483_s3 = inlined_call_operand.hbm [shape: bf16[128,128], index: 3, kind: input, shape index: {}]   ;;  %s484_s4 = inlined_call_operand.vmem [shape: f32[1,128], index: 4, kind: input, shape index: {}]   ;;  %s485_s5 = inlined_call_operand.hbm [shape: f32[16,128], index: 5, kind: output, shape index: {}]  }
   0x1   :  { %11 = vsyncpa [#allocation6], 0 }
   0x2   :  { %12 = vsyncpa [#allocation4], 0  ;;  %s380_s18 = smov [#allocation2]   ;;  %s308_s22 = scalar_lea.hbm %s480_s0, 256 }
   0x3   :  { %s18_s19 = sshll.u32 %s380_s18, 4  ;;  %p309_p0 = scmp.ne.s32.totalorder %s480_s0, %s308_s22  ;;  %s19_s19 = int_to_ptr.vmem [resolvable:$true] %s18_s19 }
   0x4   :  { %p312_p1 = scmp.lt.u32.totalorder %s308_s22, %s480_s0 }
   0x6   :  { %p314_p2 = pnand %p312_p1, %p309_p0 }
   0x8   :  { %317 = shalt.err (!%p314_p2)
}
   0x9   :  { %s318_s27 = scalar_lea.vmem %s19_s19, 256  ;;  %p323_p4 = scmp.lt.s32.totalorder %s19_s19, %s19_s19 }
   0xa   :  { %p319_p3 = scmp.ne.s32.totalorder %s19_s19, %s318_s27  ;;  %p324_p5 = scmp.lt.s32.totalorder %s318_s27, %s318_s27 }
   0xc   :  { %p325_p6 = por %p324_p5, %p323_p4 }
   0xe   :  { %p326_p7 = pnand %p325_p6, %p319_p3 }
  0x10   :  { %329 = shalt.err (!%p326_p7)
}
  0x11   :  { %s381_s28 = smov 128   ;;  %s382_s29 = smov 8  }
  0x12   :  { %24 = dma.hbm_to_vmem [thread:$0]  %s480_s0, 256, %s19_s19, [#allocation3], %s381_s28, %s381_s28, %s382_s29  }
  0x13   :  { %s383_s7 = smov [#allocation5]   ;;  %s330_s11 = scalar_lea.hbm %s483_s3, 1024 }
  0x14   :  { %s34_s8 = sshll.u32 %s383_s7, 4  ;;  %p331_p8 = scmp.ne.s32.totalorder %s483_s3, %s330_s11  ;;  %s35_s8 = int_to_ptr.vmem [resolvable:$true] %s34_s8 }
  0x15   :  { %p334_p9 = scmp.lt.u32.totalorder %s330_s11, %s483_s3 }
  0x17   :  { %p336_p10 = pnand %p334_p9, %p331_p8 }
  0x19   :  { %339 = shalt.err (!%p336_p10)
}
  0x1a   :  { %s340_s16 = scalar_lea.vmem %s35_s8, 1024  ;;  %p345_p12 = scmp.lt.s32.totalorder %s35_s8, %s35_s8 }
  0x1b   :  { %p341_p11 = scmp.ne.s32.totalorder %s35_s8, %s340_s16  ;;  %p346_p13 = scmp.lt.s32.totalorder %s340_s16, %s340_s16 }
  0x1d   :  { %p347_p0 = por %p346_p13, %p345_p12 }
  0x1f   :  { %p348_p1 = pnand %p347_p0, %p341_p11 }
  0x21   :  { %351 = shalt.err (!%p348_p1)
}
  0x22   :  { %s384_s0 = smov 64   ;;  %s385_s17 = smov 4  }
  0x23   :  { %40 = dma.hbm_to_vmem [thread:$0]  %s483_s3, 1024, %s35_s8, [#allocation6], %s384_s0, %s384_s0, %s385_s17  }
  0x24   :  { %374 = dma.done.wait [#allocation3], 256  }
  0x25   :  { %375 = vsyncadd [#allocation3], 4294967040 }
  0x26   :  { %376 = dma.done.wait [#allocation6], 1024  }
  0x27   :  { %377 = vsyncadd [#allocation6], 4294966272  ;;  %v446_v0 = vld [vmem:[#allocation2] sm:$0xff]  ;;  %v448_v1 = vld [vmem:[#allocation2 + $0x8] sm:$0xff]  ;;  %v386_v11 = vmov 0.0   ;;  %vm387_vm0 = vmmov 0  }
  0x28   :  { %52 = vadd.xlane.f32.xlu0 %v446_v0  ;;  %v292_v10 = vld [vmem:[#allocation5] sm:$0xff]   ;;  %263 = vmatprep.subr.bf16.mxu0 %v386_v11  ;;  %v293_v12 = vld [vmem:[#allocation5 + $0x8] sm:$0xff]   ;;  %v294_v13 = vld [vmem:[#allocation5 + $0x10] sm:$0xff]  }
  0x29   :  { %264 = vmatpush3.bf16.msra.mxu0 %v292_v10  ;;  %v295_v14 = vld [vmem:[#allocation5 + $0x18] sm:$0xff]   ;;  %v296_v15 = vld [vmem:[#allocation5 + $0x20] sm:$0xff]   ;;  %279 = vmatprep.mubr.msk.bf16.mxu0 %vm387_vm0, %v386_v11  ;;  %v297_v16 = vld [vmem:[#allocation5 + $0x28] sm:$0xff]  }
  0x2a   :  { %265 = vmatprep.subr.bf16.mxu0 %v386_v11  ;;  %v298_v17 = vld [vmem:[#allocation5 + $0x30] sm:$0xff]   ;;  %v299_v18 = vld [vmem:[#allocation5 + $0x38] sm:$0xff]  }
  0x2b   :  { %v243_v37 = vld [vmem:[%s481_s1] ss:$0 sm:$0xff]  ;;  %s388_s1 = smov [#allocation7]  }
  0x2c   :  { %54 = vadd.xlane.f32.xlu0 %v448_v1  ;;  %v244_v41 = vld [vmem:[%s482_s2] ss:$0 sm:$0xff]  ;;  %s230_s25 = sshll.u32 %s388_s1, 4  ;;  %s231_s25 = int_to_ptr.vmem [resolvable:$true] %s230_s25 }
  0x2d   :  { %266 = vmatpush3.bf16.msra.mxu0 %v293_v12  ;;  %v245_v46 = vld [vmem:[%s484_s4] ss:$0 sm:$0xff]  ;;  %s352_s2 = scalar_lea.vmem %s231_s25, 256  ;;  %p357_p3 = scmp.lt.s32.totalorder %s231_s25, %s231_s25 }
  0x2e   :  { %267 = vmatprep.subr.bf16.mxu0 %v386_v11  ;;  %p353_p2 = scmp.ne.s32.totalorder %s231_s25, %s352_s2  ;;  %p358_p4 = scmp.lt.s32.totalorder %s352_s2, %s352_s2 }
  0x30   :  { %p359_p5 = por %p358_p4, %p357_p3 }
  0x31   :  { %268 = vmatpush3.bf16.msra.mxu0 %v294_v13 }
  0x32   :  { %269 = vmatprep.subr.bf16.mxu0 %v386_v11  ;;  %p360_p6 = pnand %p359_p5, %p353_p2 }
  0x35   :  { %270 = vmatpush3.bf16.msra.mxu0 %v295_v14 }
  0x36   :  { %271 = vmatprep.subr.bf16.mxu0 %v386_v11 }
  0x39   :  { %272 = vmatpush3.bf16.msra.mxu0 %v296_v15 }
  0x3a   :  { %273 = vmatprep.subr.bf16.mxu0 %v386_v11 }
  0x3d   :  { %274 = vmatpush3.bf16.msra.mxu0 %v297_v16 }
  0x3e   :  { %275 = vmatprep.subr.bf16.mxu0 %v386_v11 }
  0x41   :  { %276 = vmatpush3.bf16.msra.mxu0 %v298_v17 }
  0x42   :  { %277 = vmatprep.subr.bf16.mxu0 %v386_v11 }
  0x45   :  { %278 = vmatpush3.bf16.msra.mxu0 %v299_v18 }
  0xb5   :  { %v53_v2 = vpop.xlane.xlu0 %52 }
  0xb6   :  { %v57_v3 = vmul.f32 0.0078125, %v53_v2 }
  0xb8   :  { %v59_v4 = vsub.f32 %v446_v0, %v57_v3 }
  0xb9   :  { %v55_v5 = vpop.xlane.xlu0 %54 }
  0xba   :  { %v58_v6 = vmul.f32 0.0078125, %v55_v5  ;;  %v61_v7 = vmul.f32 %v59_v4, %v59_v4 }
  0xbc   :  { %v60_v8 = vsub.f32 %v448_v1, %v58_v6  ;;  %63 = vadd.xlane.f32.xlu1 %v61_v7 }
  0xbe   :  { %v62_v9 = vmul.f32 %v60_v8, %v60_v8 }
  0xc0   :  { %65 = vadd.xlane.f32.xlu1 %v62_v9 }
 0x149   :  { %v64_v19 = vpop.xlane.xlu1 %63 }
 0x14a   :  { %v68_v20 = vmul.f32 0.007874016, %v64_v19 }
 0x14c   :  { %300 = vrsqrt.f32 %v68_v20  ;;  %vm72_vm1 = vcmp.eq.f32.partialorder %v68_v20, inf  ;;  %v75_v25 = vand.u32 2147483648, %v68_v20  ;;  %vm74_vm2 = vcmp.eq.f32.partialorder %v68_v20, 0.0 }
 0x14d   :  { %v66_v21 = vpop.xlane.xlu1 %65 }
 0x14e   :  { %v69_v22 = vmul.f32 0.007874016, %v66_v21 }
 0x150   :  { %302 = vrsqrt.f32 %v69_v22  ;;  %vm79_vm3 = vcmp.eq.f32.partialorder %v69_v22, inf  ;;  %v82_v31 = vand.u32 2147483648, %v69_v22  ;;  %vm81_vm4 = vcmp.eq.f32.partialorder %v69_v22, 0.0 }
 0x156   :  { %v301_v23 = vpop.eup %300 }
 0x157   :  { %v71_v24 = vmul.f32 %v301_v23, %v68_v20 }
 0x159   :  { %v73_v26 = vsel %vm72_vm1, %v68_v20, %v71_v24 }
 0x15a   :  { %v303_v27 = vpop.eup %302  ;;  %v76_v28 = vsel %vm74_vm2, %v75_v25, %v73_v26 }
 0x15b   :  { %v84_v29 = vadd.f32 1e-06, %v76_v28  ;;  %v78_v30 = vmul.f32 %v303_v27, %v69_v22 }
 0x15d   :  { %v80_v32 = vsel %vm79_vm3, %v69_v22, %v78_v30  ;;  %304 = vrcp.f32 %v84_v29 }
 0x15e   :  { %v83_v33 = vsel %vm81_vm4, %v82_v31, %v80_v32 }
 0x15f   :  { %v85_v34 = vadd.f32 1e-06, %v83_v33 }
 0x161   :  { %306 = vrcp.f32 %v85_v34 }
 0x167   :  { %v305_v35 = vpop.eup %304 }
 0x168   :  { %v88_v36 = vmul.f32 %v305_v35, %v59_v4 }
 0x16a   :  { %v97_v40 = vmul.f32 %v243_v37, %v88_v36 }
 0x16b   :  { %v307_v38 = vpop.eup %306 }
 0x16c   :  { %v89_v39 = vmul.f32 %v307_v38, %v60_v8  ;;  %v106_v43 = vadd.f32 %v244_v41, %v97_v40 }
 0x16e   :  { %v98_v42 = vmul.f32 %v243_v37, %v89_v39 }
 0x170   :  { %v107_v44 = vadd.f32 %v244_v41, %v98_v42 }
 0x172   :  { %v108_v45 = vpack.c.bf16 %v107_v44, %v106_v43 }
 0x174   :  { %280 = vmatmul.mubr.bf16.vlgmr.msra.gmra.mrb[0].mxu0 %v108_v45 }
 0x247   :  { %v214_v47 = vpop.f32.mrb[0].mxu0 }
 0x248   :  { %v215_v48 = vadd.f32 %v245_v46, %v214_v47  ;;  %v281_v49 = vpop.f32.mrb[1].mxu0 }
 0x249   :  { %v217_v50 = vpop.f32.mrb[2].mxu0 }
 0x24a   :  { %v221_v51 = vadd.f32 %v215_v48, %v446_v0  ;;  %v218_v52 = vadd.f32 %v245_v46, %v217_v50  ;;  %v282_v53 = vpop.f32.mrb[3].mxu0 }
 0x24c   :  { %223 = vst [vmem:[#allocation7] sm:$0xff] %v221_v51  ;;  %v222_v54 = vadd.f32 %v218_v52, %v448_v1 }
 0x24e   :  { %224 = vst [vmem:[#allocation7 + $0x8] sm:$0xff] %v222_v54 }
 0x24f   :  { %363 = shalt.err (!%p360_p6)
}
 0x250   :  { %s364_s27 = scalar_lea.hbm %s485_s5, 256 }
 0x251   :  { %p365_p7 = scmp.ne.s32.totalorder %s485_s5, %s364_s27  ;;  %p368_p8 = scmp.lt.u32.totalorder %s364_s27, %s485_s5 }
 0x253   :  { %p370_p9 = pnand %p368_p8, %p365_p7 }
 0x255   :  { %373 = shalt.err (!%p370_p9)
}
 0x256   :  { %236 = dma.vmem_to_hbm [thread:$0]  %s231_s25, 256, %s485_s5, [#allocation4], %s381_s28, %s381_s28, %s382_s29  }
 0x257   :  { %378 = dma.done.wait [#allocation4], 256  }
 0x258   :  { %379 = vsyncadd [#allocation4], 4294967040 }
 0x259   :  { %240 = vsyncpa [#allocation3], 1 }
 0x25a   :  { %241 = vsyncpa [#allocation6], 1 }
 0x25b   :  { %242 = vsyncpa [#allocation4], 1 }

</bundles_post_ra>
